<compile_context>
chip_gen: v5e
topology: v5e:2x2
jax: 0.10.0
libtpu: 0.0.40
codegen_flags: <defaults>
</compile_context>

<pallas_src>
import functools

import jax
import jax.numpy as jnp
import numpy as np
from jax.experimental import pallas as pl
from jax.experimental.pallas import tpu as pltpu


# ----------------------------------------------------------------------------
# Fused kernel: one linear for all heads + all propagation of the forward.
# Everything fits in VMEM at these sizes, so whole-array blocks (no grid).
# ----------------------------------------------------------------------------
def _fused_gcn_kernel(x_ref, w_ref, b_ref, ae_ref, ak_ref, out_ref, *, hidden):
    f32 = jnp.float32
    bf16 = jnp.bfloat16

    # Linear for all four output column groups at once: lin = x @ W4 + b4.
    # x / W4 arrive bf16 (single MXU pass, halved DMA); accumulate + bias in f32.
    lin = jnp.dot(x_ref[...], w_ref[...],
                  preferred_element_type=f32) + b_ref[...]          # (N, 4H) f32
    lin_bf = lin.astype(bf16)

    # Adjacency powers by repeated squaring (kept f32: precision-critical part
    # of the K=10 chain; chain depth 4 instead of 10 sequential steps).
    ae = ae_ref[...]
    a2 = jnp.dot(ae, ae, preferred_element_type=f32)
    a4 = jnp.dot(a2, a2, preferred_element_type=f32)
    a8 = jnp.dot(a4, a4, preferred_element_type=f32)
    a10 = jnp.dot(a8, a2, preferred_element_type=f32)

    # Three independent propagation matmuls on the full (N, 4H) slab —
    # same MXU pass count as per-head slices at these shapes, zero lane slicing.
    h2 = jnp.dot(a2.astype(bf16), lin_bf, preferred_element_type=f32)    # A^2  @ lin
    h10 = jnp.dot(a10.astype(bf16), lin_bf, preferred_element_type=f32)  # A^10 @ lin
    hk = jnp.dot(ak_ref[...].astype(bf16), lin_bf,
                 preferred_element_type=f32)                             # A_knn @ lin

    # Lane-mask assembly of the (N, 4H=128) slab [h0 | h1 | z0 | z1]:
    #   h0 = h2[:, 0:H], h1 = h10[:, H:2H], z0 = h2[:, 2H:3H],
    #   z1 = h2[:, 3H:4H] + hk[:, 3H:4H]   (f2 weights duplicated in cols 3H:4H)
    col = jax.lax.broadcasted_iota(jnp.int32, h2.shape, 1)
    use_a10 = jnp.logical_and(col >= hidden, col < 2 * hidden)
    add_knn = col >= 3 * hidden
    out = jnp.where(use_a10, h10, h2) + jnp.where(add_knn, hk, 0.0)
    out_ref[...] = out.astype(out_ref.dtype)


# ----------------------------------------------------------------------------
# Glue: dense gcn_norm (add remaining self loops + symmetric degree norm).
# Tiny setup work, kept in plain JAX.
# ----------------------------------------------------------------------------
def gcn_norm_dense(edge_index, num_nodes, edge_weight=None):
    row = edge_index[0]
    col = edge_index[1]
    if edge_weight is None:
        edge_weight = jnp.ones((edge_index.shape[1],), dtype=jnp.float32)
    # M[target, source] = sum of edge weights for edge (source -> target)
    m = jnp.zeros((num_nodes, num_nodes), dtype=jnp.float32)
    m = m.at[col, row].add(edge_weight)
    # add_remaining_self_loops: fill value 1.0 only where no self loop exists
    diag = jnp.diagonal(m)
    m = m + jnp.diag(jnp.where(diag == 0.0, 1.0, 0.0))
    # deg = scatter_add(edge_weight, col) == row-sums of M
    deg = m.sum(axis=1)
    dinv = jnp.where(deg > 0.0, deg ** -0.5, 0.0)   # masked_fill(inf, 0)
    return dinv[:, None] * m * dinv[None, :]


# ----------------------------------------------------------------------------
# Model forward (mirrors Model.forward) -- single fused pallas_call.
# ----------------------------------------------------------------------------
def model_forward(params, x, edge_index, knn_graph):
    n, f_in = x.shape
    hdim = params["s1_w"].shape[0]
    out_cols = 4 * hdim

    a_edge = gcn_norm_dense(edge_index, n)
    a_knn = gcn_norm_dense(knn_graph, n)

    # Pre-transposed fused weight (F, 4H) = [s1 | s2 | f2 | f2]; f2 duplicated
    # so the z1 column group gets its own lanes (no in-kernel slicing).
    w4 = jnp.concatenate([params["s1_w"].T, params["s2_w"].T,
                          params["f2_w"].T, params["f2_w"].T], axis=1)
    b4 = jnp.concatenate([params["s1_b"], params["s2_b"],
                          params["f2_b"], params["f2_b"]]).reshape(1, out_cols)

    # bf16 MXU operands; bias stays f32.
    x_bf = x.astype(jnp.bfloat16)
    w4_bf = w4.astype(jnp.bfloat16)

    kernel = functools.partial(_fused_gcn_kernel, hidden=hdim)

    flops = (2 * n * f_in * out_cols          # fused linear
             + 4 * 2 * n * n * n              # adjacency repeated squaring
             + 3 * 2 * n * n * out_cols)      # A^2 / A^10 / A_knn propagation
    bytes_accessed = (2 * (x_bf.size + w4_bf.size)
                      + 4 * (b4.size + a_edge.size + a_knn.size + n * out_cols))

    # Right-sized VMEM request (actual footprint is tiny; stay well under
    # v7x's 64 MiB/TC while leaving Mosaic internal-scratch headroom).
    vmem_limit = int(max(2 * bytes_accessed + (1 << 20), 2 << 20))

    out = pl.pallas_call(
        kernel,
        out_shape=jax.ShapeDtypeStruct((n, out_cols), jnp.float32),
        in_specs=[pl.BlockSpec(memory_space=pltpu.MemorySpace.VMEM)] * 5,
        out_specs=pl.BlockSpec(memory_space=pltpu.MemorySpace.VMEM),
        cost_estimate=pl.CostEstimate(flops=flops, transcendentals=0,
                                      bytes_accessed=bytes_accessed),
        compiler_params=pltpu.CompilerParams(vmem_limit_bytes=vmem_limit),
    )(x_bf, w4_bf, b4, a_edge, a_knn)

    h0 = out[:, 0:hdim]
    h1 = out[:, hdim:2 * hdim]
    z0 = out[:, 2 * hdim:3 * hdim]
    z1 = out[:, 3 * hdim:4 * hdim]
    return h0, h1, z0, z1


# ----------------------------------------------------------------------------
# Pure-JAX reference (mirrors the original per-head implementation, f32).
# ----------------------------------------------------------------------------
def _ref_gcn(x, w, b, a, k):
    h = x @ w.T + b
    for _ in range(k):
        h = a @ h
    return h


def ref_forward(params, x, edge_index, knn_graph):
    n = x.shape[0]
    ae = gcn_norm_dense(edge_index, n)
    ak = gcn_norm_dense(knn_graph, n)
    h0 = _ref_gcn(x, params["s1_w"], params["s1_b"], ae, 2)
    h1 = _ref_gcn(x, params["s2_w"], params["s2_b"], ae, 10)
    z0 = _ref_gcn(x, params["f2_w"], params["f2_b"], ae, 2)
    z1 = z0 + _ref_gcn(x, params["f2_w"], params["f2_b"], ak, 1)
    return h0, h1, z0, z1


def init_params(key, num_features, num_hidden):
    """Deterministic Linear init (uniform, like PyTorch reset_parameters)."""
    params = {}
    bound = 1.0 / jnp.sqrt(jnp.float32(num_features))
    names = ["s1", "s2", "f1", "f2"]   # f1 exists in the module but is unused
    keys = jax.random.split(key, 2 * len(names))
    for i, name in enumerate(names):
        params[f"{name}_w"] = jax.random.uniform(
            keys[2 * i], (num_hidden, num_features), jnp.float32, -bound, bound)
        params[f"{name}_b"] = jax.random.uniform(
            keys[2 * i + 1], (num_hidden,), jnp.float32, -bound, bound)
    return params


if __name__ == "__main__":
    key = jax.random.PRNGKey(0)
    k_param, k_x = jax.random.split(key)

    N = 16            # nodes
    F_IN = 8          # num_features
    H = 32            # num_hidden  -> fused output slab is (N, 4H=128)

    params = init_params(k_param, F_IN, H)
    x = jax.random.normal(k_x, (N, F_IN), dtype=jnp.float32)

    # edge_index: bidirectional ring graph, shape (2, 2N)
    src = jnp.arange(N, dtype=jnp.int32)
    dst = (src + 1) % N
    edge_index = jnp.stack([jnp.concatenate([src, dst]),
                            jnp.concatenate([dst, src])], axis=0)

    # knn_graph: bidirectional "skip-2" graph, shape (2, 2N)
    dst2 = (src + 2) % N
    knn_graph = jnp.stack([jnp.concatenate([src, dst2]),
                           jnp.concatenate([dst2, src])], axis=0)

    fwd = jax.jit(model_forward)
    h0, h1, z0, z1 = fwd(params, x, edge_index, knn_graph)
    jax.block_until_ready((h0, h1, z0, z1))

    assert h0.shape == (N, H) and h1.shape == (N, H)
    assert z0.shape == (N, H) and z1.shape == (N, H)

    # Sanity check against the pure-JAX f32 per-head reference.  Tolerance
    # accounts for bf16 MXU operands on the feature path (adjacency powers are
    # still computed in f32, so the drift over the effective K=10 chain stays
    # at the ~1e-2 level).
    r0, r1, r2, r3 = ref_forward(params, x, edge_index, knn_graph)
    for got, want in ((h0, r0), (h1, r1), (z0, r2), (z1, r3)):
        assert np.allclose(np.asarray(got), np.asarray(want),
                           rtol=5e-2, atol=5e-2)

    print("KERNEL_OK")
</pallas_src>

<mosaic_0001>
module attributes {stable_mosaic.version = 11 : i64} {
  func.func @_fused_gcn_kernel(%arg0: memref<16x8xbf16, #tpu.memory_space<vmem>>, %arg1: memref<8x128xbf16, #tpu.memory_space<vmem>>, %arg2: memref<1x128xf32, #tpu.memory_space<vmem>>, %arg3: memref<16x16xf32, #tpu.memory_space<vmem>>, %arg4: memref<16x16xf32, #tpu.memory_space<vmem>>, %arg5: memref<16x128xf32, #tpu.memory_space<vmem>>) attributes {dimension_semantics = [], scalar_prefetch = 0 : i64, scratch_operands = 0 : i64, tpu.core_type = #tpu.core_type<tc>} {
    %c0 = arith.constant 0 : index
    %c0_0 = arith.constant 0 : index
    %0 = vector.load %arg0[%c0, %c0_0] : memref<16x8xbf16, #tpu.memory_space<vmem>>, vector<16x8xbf16>
    %c0_1 = arith.constant 0 : index
    %c0_2 = arith.constant 0 : index
    %1 = vector.load %arg1[%c0_1, %c0_2] : memref<8x128xbf16, #tpu.memory_space<vmem>>, vector<8x128xbf16>
    %cst = arith.constant dense<0.000000e+00> : vector<16x128xf32>
    %2 = tpu.matmul %0, %1, %cst {dimension_numbers = #tpu.dot_dimension_numbers<[1], [0], [0], [1], [0, 0, 1, 1], [], []>} : vector<16x8xbf16>, vector<8x128xbf16>, vector<16x128xf32> -> vector<16x128xf32>
    %c0_3 = arith.constant 0 : index
    %c0_4 = arith.constant 0 : index
    %3 = vector.load %arg2[%c0_3, %c0_4] : memref<1x128xf32, #tpu.memory_space<vmem>>, vector<1x128xf32>
    %4 = vector.broadcast %3 : vector<1x128xf32> to vector<16x128xf32>
    %5 = arith.addf %2, %4 : vector<16x128xf32>
    %6 = arith.truncf %5 : vector<16x128xf32> to vector<16x128xbf16>
    %c0_5 = arith.constant 0 : index
    %c0_6 = arith.constant 0 : index
    %7 = vector.load %arg3[%c0_5, %c0_6] : memref<16x16xf32, #tpu.memory_space<vmem>>, vector<16x16xf32>
    %cst_7 = arith.constant dense<0.000000e+00> : vector<16x16xf32>
    %8 = tpu.matmul %7, %7, %cst_7 {dimension_numbers = #tpu.dot_dimension_numbers<[1], [0], [0], [1], [0, 0, 1, 1], [], []>} : vector<16x16xf32>, vector<16x16xf32>, vector<16x16xf32> -> vector<16x16xf32>
    %cst_8 = arith.constant dense<0.000000e+00> : vector<16x16xf32>
    %9 = tpu.matmul %8, %8, %cst_8 {dimension_numbers = #tpu.dot_dimension_numbers<[1], [0], [0], [1], [0, 0, 1, 1], [], []>} : vector<16x16xf32>, vector<16x16xf32>, vector<16x16xf32> -> vector<16x16xf32>
    %cst_9 = arith.constant dense<0.000000e+00> : vector<16x16xf32>
    %10 = tpu.matmul %9, %9, %cst_9 {dimension_numbers = #tpu.dot_dimension_numbers<[1], [0], [0], [1], [0, 0, 1, 1], [], []>} : vector<16x16xf32>, vector<16x16xf32>, vector<16x16xf32> -> vector<16x16xf32>
    %cst_10 = arith.constant dense<0.000000e+00> : vector<16x16xf32>
    %11 = tpu.matmul %10, %8, %cst_10 {dimension_numbers = #tpu.dot_dimension_numbers<[1], [0], [0], [1], [0, 0, 1, 1], [], []>} : vector<16x16xf32>, vector<16x16xf32>, vector<16x16xf32> -> vector<16x16xf32>
    %12 = arith.truncf %8 : vector<16x16xf32> to vector<16x16xbf16>
    %cst_11 = arith.constant dense<0.000000e+00> : vector<16x128xf32>
    %13 = tpu.matmul %12, %6, %cst_11 {dimension_numbers = #tpu.dot_dimension_numbers<[1], [0], [0], [1], [0, 0, 1, 1], [], []>} : vector<16x16xbf16>, vector<16x128xbf16>, vector<16x128xf32> -> vector<16x128xf32>
    %14 = arith.truncf %11 : vector<16x16xf32> to vector<16x16xbf16>
    %cst_12 = arith.constant dense<0.000000e+00> : vector<16x128xf32>
    %15 = tpu.matmul %14, %6, %cst_12 {dimension_numbers = #tpu.dot_dimension_numbers<[1], [0], [0], [1], [0, 0, 1, 1], [], []>} : vector<16x16xbf16>, vector<16x128xbf16>, vector<16x128xf32> -> vector<16x128xf32>
    %c0_13 = arith.constant 0 : index
    %c0_14 = arith.constant 0 : index
    %16 = vector.load %arg4[%c0_13, %c0_14] : memref<16x16xf32, #tpu.memory_space<vmem>>, vector<16x16xf32>
    %17 = arith.truncf %16 : vector<16x16xf32> to vector<16x16xbf16>
    %cst_15 = arith.constant dense<0.000000e+00> : vector<16x128xf32>
    %18 = tpu.matmul %17, %6, %cst_15 {dimension_numbers = #tpu.dot_dimension_numbers<[1], [0], [0], [1], [0, 0, 1, 1], [], []>} : vector<16x16xbf16>, vector<16x128xbf16>, vector<16x128xf32> -> vector<16x128xf32>
    %19 = tpu.iota {dimensions = array<i32: 1>} : vector<16x128xi32>
    %c32_i32 = arith.constant 32 : i32
    %20 = vector.broadcast %c32_i32 : i32 to vector<16x128xi32>
    %21 = arith.cmpi sge, %19, %20 : vector<16x128xi32>
    %c64_i32 = arith.constant 64 : i32
    %22 = vector.broadcast %c64_i32 : i32 to vector<16x128xi32>
    %23 = arith.cmpi slt, %19, %22 : vector<16x128xi32>
    %24 = arith.andi %21, %23 : vector<16x128xi1>
    %c96_i32 = arith.constant 96 : i32
    %25 = vector.broadcast %c96_i32 : i32 to vector<16x128xi32>
    %26 = arith.cmpi sge, %19, %25 : vector<16x128xi32>
    %27 = arith.select %24, %15, %13 : vector<16x128xi1>, vector<16x128xf32>
    %cst_16 = arith.constant 0.000000e+00 : f32
    %28 = vector.broadcast %cst_16 : f32 to vector<16x128xf32>
    %29 = arith.select %26, %18, %28 : vector<16x128xi1>, vector<16x128xf32>
    %30 = arith.addf %27, %29 : vector<16x128xf32>
    %c0_17 = arith.constant 0 : index
    %c0_18 = arith.constant 0 : index
    %31 = vector.load %arg5[%c0_17, %c0_18] : memref<16x128xf32, #tpu.memory_space<vmem>>, vector<16x128xf32>
    tpu.vector_store %arg5[%c0_17, %c0_18], %30 {strides = array<i32>} : memref<16x128xf32, #tpu.memory_space<vmem>>, vector<16x128xf32>,
    return
  }
}

</mosaic_0001>

<bundles_post_ra>
// kernel: model_forward.1
= control target key start
LH: loop header
LB: loop body
LE: loop exit
PB: predicated region body
PF: predicated region fallthrough
CT: control target
= control target key end

     0   :  { %vm37_vm0 = vcmask 1043456   ;;  %vm58_vm1 = vcmask 130048   ;;  %vm33_vm2 = vcmask 64512   ;;  %v231_v24 = vlaneseq  ;;  %s335_s3 = inlined_call_operand.vmem [shape: f32[16,16], index: 3, kind: input, shape index: {}]   ;;  %s336_s1 = inlined_call_operand.vmem [shape: bf16[8,128], index: 1, kind: input, shape index: {}]   ;;  %s337_s0 = inlined_call_operand.vmem [shape: bf16[16,8], index: 0, kind: input, shape index: {}]   ;;  %s338_s2 = inlined_call_operand.vmem [shape: f32[1,128], index: 2, kind: input, shape index: {}]   ;;  %s339_s4 = inlined_call_operand.vmem [shape: f32[16,16], index: 4, kind: input, shape index: {}]   ;;  %s340_s5 = inlined_call_operand.vmem [shape: f32[16,128], index: 5, kind: output, shape index: {}]  }
   0x1   :  { %v57_v0 = vld [vmem:[%s335_s3 + $0x8] sm:$0xff]  ;;  %v23_v1 = vld [vmem:[%s336_s1] sm:$0xf] }
   0x2   :  { %v56_v2 = vld [vmem:[%s335_s3] sm:$0xff]  ;;  %79 = vmatpush.msra.mxu1 %v57_v0  ;;  %v39_v3 = vsel %vm37_vm0, %v23_v1, 0  ;;  %v212_v19 = vld [vmem:[%s339_s4 + $0x8] sm:$0xff]  ;;  %v232_v25 = vand.u32 127, %v231_v24 }
   0x3   :  { %v265_v4 = vld [vmem:[%s337_s0] sm:$0xff]  ;;  %48 = vmatpush.bf16.msra.mxu0 %v39_v3 }
   0x4   :  { %80 = vmatpush.msra.mxu1 %v56_v2  ;;  %v266_v7 = vld [vmem:[%s338_s2] ss:$0 sm:$0xff]  ;;  %vm233_vm3 = vcmp.ge.s32.totalorder %v232_v25, 32  ;;  %vm234_vm4 = vcmp.lt.s32.totalorder %v232_v25, 64  ;;  %vm236_vm5 = vcmp.ge.s32.totalorder %v232_v25, 96 }
   0x5   :  { %254 = vmatmul.msk.f32.vlgmr.msra.gmra.mxu1 %vm58_vm1, %v56_v2  ;;  %v211_v18 = vld [vmem:[%s339_s4] sm:$0xff]  ;;  %vm235_vm6 = vmand %vm233_vm3, %vm234_vm4 }
   0x6   :  { %253 = vmatmul.msk.bf16.vlgmr.msra.gmra.mxu0 %vm33_vm2, %v265_v4  ;;  %v213_v20 = vpack.c.bf16 %v212_v19, %v211_v18 }
   0xd   :  { %255 = vmatmul.msk.f32.gmra.mxu1 %vm58_vm1, %v57_v0 }
  0x82   :  { %v82_v5 = vpop.f32.mrf.mxu1 }
  0x83   :  { %v50_v6 = vpop.f32.mrf.mxu0 }
  0x84   :  { %v51_v8 = vadd.f32 %v266_v7, %v50_v6 }
  0x8a   :  { %v85_v9 = vpop.f32.mrf.mxu1 }
  0x8b   :  { %v52_v10 = vpop.f32.mrf.mxu0  ;;  %108 = vmatpush.msra.mxu2 %v85_v9  ;;  %166 = vmatpush.msrb.mxu0 %v85_v9  ;;  %v175_v13 = vpack.c.bf16 %v85_v9, %v82_v5 }
  0x8c   :  { %v53_v11 = vadd.f32 %v266_v7, %v52_v10 }
  0x8d   :  { %109 = vmatpush.msra.mxu2 %v82_v5  ;;  %167 = vmatpush.msrb.mxu0 %v82_v5 }
  0x8e   :  { %v55_v12 = vpack.c.bf16 %v53_v11, %v51_v8  ;;  %256 = vmatmul.msk.f32.vlgmr.msra.gmra.mxu2 %vm58_vm1, %v82_v5 }
  0x90   :  { %186 = vmatpush.bf16.msrb.mxu1 %v55_v12  ;;  %204 = vmatpush.bf16.msrb.mxu2 %v55_v12 }
  0x93   :  { %262 = vmatmul.msk.bf16.vlgmr.msrb.gmra.mxu1 %vm58_vm1, %v175_v13 }
  0x96   :  { %257 = vmatmul.msk.f32.gmra.mxu2 %vm58_vm1, %v85_v9 }
 0x110   :  { %v188_v27 = vpop.f32.mrf.mxu1 }
 0x111   :  { %v111_v14 = vpop.f32.mrf.mxu2 }
 0x118   :  { %v190_v33 = vpop.f32.mrf.mxu1 }
 0x119   :  { %v114_v15 = vpop.f32.mrf.mxu2 }
 0x11a   :  { %137 = vmatpush.msra.mxu3 %v114_v15 }
 0x11c   :  { %138 = vmatpush.msra.mxu3 %v111_v14 }
 0x11d   :  { %258 = vmatmul.msk.f32.vlgmr.msra.gmra.mxu3 %vm58_vm1, %v111_v14 }
 0x11e   :  { %224 = vmatpush.bf16.msrb.mxu3 %v55_v12 }
 0x125   :  { %259 = vmatmul.msk.f32.gmra.mxu3 %vm58_vm1, %v114_v15 }
 0x12d   :  { %264 = vmatmul.msk.bf16.vlgmr.msrb.gmra.mxu3 %vm58_vm1, %v213_v20 }
 0x1a0   :  { %v140_v16 = vpop.f32.mrf.mxu3 }
 0x1a1   :  { %260 = vmatmul.msk.f32.vlgmr.msrb.gmra.mxu0 %vm58_vm1, %v140_v16 }
 0x1a8   :  { %v143_v17 = vpop.f32.mrf.mxu3 }
 0x1a9   :  { %261 = vmatmul.msk.f32.gmra.mxu0 %vm58_vm1, %v143_v17 }
 0x1b0   :  { %v226_v26 = vpop.f32.mrf.mxu3 }
 0x1b1   :  { %v239_v28 = vsel %vm236_vm5, %v226_v26, 0.0 }
 0x1b8   :  { %v228_v32 = vpop.f32.mrf.mxu3 }
 0x1b9   :  { %v240_v35 = vsel %vm236_vm5, %v228_v32, 0.0 }
 0x21e   :  { %v169_v21 = vpop.f32.mrf.mxu0 }
 0x226   :  { %v172_v22 = vpop.f32.mrf.mxu0 }
 0x227   :  { %v193_v23 = vpack.c.bf16 %v172_v22, %v169_v21 }
 0x229   :  { %263 = vmatmul.msk.bf16.vlgmr.msrb.gmra.mxu2 %vm58_vm1, %v193_v23 }
 0x2ac   :  { %v206_v29 = vpop.f32.mrf.mxu2 }
 0x2ad   :  { %v237_v30 = vsel %vm235_vm6, %v206_v29, %v188_v27 }
 0x2ae   :  { %v241_v31 = vadd.f32 %v239_v28, %v237_v30 }
 0x2b0   :  { %243 = vst [vmem:[%s340_s5] sm:$0xff] %v241_v31 }
 0x2b4   :  { %v208_v34 = vpop.f32.mrf.mxu2 }
 0x2b5   :  { %v238_v36 = vsel %vm235_vm6, %v208_v34, %v190_v33 }
 0x2b6   :  { %v242_v37 = vadd.f32 %v240_v35, %v238_v36 }
 0x2b8   :  { %244 = vst [vmem:[%s340_s5 + $0x8] sm:$0xff] %v242_v37 }

</bundles_post_ra>
